<compile_context>
chip_gen: v5e
topology: v5e:2x2
jax: 0.10.0
libtpu: 0.0.40
codegen_flags: <defaults>
</compile_context>

<pallas_src>
import jax
import jax.numpy as jnp
from jax.experimental import pallas as pl
from jax.experimental.pallas import tpu as pltpu


# ----------------------------------------------------------------------------
# kernel
# ----------------------------------------------------------------------------
def _elu1_kernel(x_ref, o_ref):
    # Compute in f32 (free on the VPU/EUP relative to HBM roofline; exact
    # parity with an f32 reference even for bf16 inputs), cast back on store.
    x = x_ref[...].astype(jnp.float32)
    o_ref[...] = jnp.where(x > 0, x + 1.0, jnp.exp(x)).astype(o_ref.dtype)


def _elu1_ref(x):
    """Plain-jnp ELU1 for tiny tails (< 128 elements)."""
    xf = x.astype(jnp.float32)
    return jnp.where(xf > 0, xf + 1.0, jnp.exp(xf)).astype(x.dtype)


# ----------------------------------------------------------------------------
# chip / layout helpers
# ----------------------------------------------------------------------------
def _sublane_multiple(dtype):
    itemsize = jnp.dtype(dtype).itemsize
    return {4: 8, 2: 16, 1: 32}.get(itemsize, 8)


_CHIP_INFO = None


def _chip_info():
    """Return (vmem_bytes_per_core, tensorcores_per_chip) with safe fallbacks."""
    global _CHIP_INFO
    if _CHIP_INFO is not None:
        return _CHIP_INFO
    vmem = 64 * 1024 * 1024  # conservative (v7x per-TC)
    cores = 2                # conservative (extra split is harmless on 1-TC)
    try:
        info = pltpu.get_tpu_info()
        v = getattr(info, "vmem_capacity_bytes", None)
        if v:
            vmem = int(v)
        c = None
        for attr in ("num_cores", "tensor_core_count", "num_tensorcores",
                     "cores_per_chip"):
            c = getattr(info, attr, None)
            if c:
                break
        if c:
            cores = int(c)
        else:
            # v7x is (currently) the only generation with <=64 MiB VMEM/TC & 2 TCs.
            cores = 2 if vmem <= 64 * 1024 * 1024 else 1
    except Exception:
        pass
    _CHIP_INFO = (vmem, cores)
    return _CHIP_INFO


# ----------------------------------------------------------------------------
# 128-aligned main path
# ----------------------------------------------------------------------------
def _elu1_aligned(flat):
    """ELU1 over a flat array whose length is a positive multiple of 128."""
    n = flat.shape[0]
    dtype = flat.dtype
    itemsize = jnp.dtype(dtype).itemsize
    sub = _sublane_multiple(dtype)

    # Widest lane-dense slab width dividing n (prefer >= sub rows).
    lane = 128
    for cand in (1024, 512, 256, 128):
        if n % cand == 0 and (n // cand) >= sub:
            lane = cand
            break
    else:
        for cand in (1024, 512, 256, 128):
            if n % cand == 0:
                lane = cand
                break

    rows = n // lane
    x2d = flat.reshape(rows, lane)

    # Per-generation VMEM budget: big blocks, default double-buffering.
    vmem_cap, cores = _chip_info()
    vmem_limit = int(min(vmem_cap // 2, 64 * 1024 * 1024))   # 64 MiB v5e/v6e, 32 MiB v7x
    target_block_bytes = min(8 * 1024 * 1024, vmem_limit // 5)

    # ---- block sizing ----
    if rows <= sub:
        block_rows = rows  # tiny input: block row dim must equal full dim
    else:
        max_rows = (rows // sub) * sub
        block_rows = (target_block_bytes // (lane * itemsize)) // sub * sub
        block_rows = int(min(max(block_rows, sub), max_rows))

        # Multi-TC chips (v7x): ensure >= 2 blocks so "parallel" shards cores.
        if cores >= 2 and rows > 2 * sub:
            two = int(pl.cdiv(pl.cdiv(rows, 2), sub) * sub)
            block_rows = min(block_rows, two)

        # Prefer a block_rows that divides rows (no nearly-empty masked last
        # block), searching within ~25% below the target.
        if rows % block_rows:
            lo = max(sub, (block_rows * 3 // 4) // sub * sub)
            for cand in range(block_rows, lo - 1, -sub):
                if rows % cand == 0:
                    block_rows = cand
                    break

        # Multi-TC chips: avoid small odd grid counts (one core idles 1/grid).
        grid_n = pl.cdiv(rows, block_rows)
        if cores >= 2 and 2 < grid_n <= 8 and grid_n % 2 == 1:
            cand = int(pl.cdiv(pl.cdiv(rows, grid_n + 1), sub) * sub)
            cand = min(max(cand, sub), max_rows)
            if pl.cdiv(rows, cand) % 2 == 0:
                block_rows = cand

    grid = (pl.cdiv(rows, block_rows),)

    out2d = pl.pallas_call(
        _elu1_kernel,
        out_shape=jax.ShapeDtypeStruct((rows, lane), dtype),
        grid_spec=pltpu.PrefetchScalarGridSpec(
            num_scalar_prefetch=0,
            grid=grid,
            in_specs=[pl.BlockSpec((block_rows, lane), lambda i: (i, 0))],
            out_specs=pl.BlockSpec((block_rows, lane), lambda i: (i, 0)),
        ),
        compiler_params=pltpu.CompilerParams(
            dimension_semantics=("parallel",),
            vmem_limit_bytes=vmem_limit,
        ),
    )(x2d)

    return out2d.reshape(-1)


# ----------------------------------------------------------------------------
# public entry point
# ----------------------------------------------------------------------------
def elu1(x):
    """ELU(x) + 1, elementwise. x: any shape, floating dtype."""
    dtype = x.dtype
    if not jnp.issubdtype(dtype, jnp.floating):
        raise TypeError(f"ELU1 expects a floating dtype, got {dtype}")

    orig_shape = x.shape
    n = x.size
    if n == 0:
        return x

    flat = x.reshape(-1)
    n_main = (n // 128) * 128

    if n_main == n:
        return _elu1_aligned(flat).reshape(orig_shape)
    if n_main == 0:
        # Fewer than 128 elements: not worth a kernel launch.
        return _elu1_ref(flat).reshape(orig_shape)

    # Ragged tail: Pallas handles the 128-aligned prefix, the <128-element tail
    # runs in plain jnp (replaces the old pad + [:n] slice round trip).
    main = _elu1_aligned(flat[:n_main])
    tail = _elu1_ref(flat[n_main:])
    return jnp.concatenate([main, tail]).reshape(orig_shape)


if __name__ == "__main__":
    key = jax.random.PRNGKey(0)
    # NCHW input, small shape: batch=2, channels=4, spatial=16x16
    x = jax.random.normal(key, (2, 4, 16, 16), dtype=jnp.float32)

    out = elu1(x)
    out = jax.block_until_ready(out)

    # reference check in plain JAX
    ref = jnp.where(x > 0, x, jnp.exp(x) - 1.0) + 1.0
    assert out.shape == x.shape
    assert out.dtype == x.dtype
    assert jnp.allclose(out, ref, atol=1e-6), "mismatch vs reference"

    # also exercise a shape that hits the ragged (non-128-divisible) path
    x2 = jax.random.normal(jax.random.PRNGKey(1), (3, 5, 7, 11), dtype=jnp.float32)
    out2 = jax.block_until_ready(elu1(x2))
    ref2 = jnp.where(x2 > 0, x2, jnp.exp(x2) - 1.0) + 1.0
    assert out2.shape == x2.shape
    assert jnp.allclose(out2, ref2, atol=1e-6), "mismatch vs reference (ragged)"

    # and a bf16 input (f32 compute inside the kernel, cast back on store)
    x3 = jax.random.normal(jax.random.PRNGKey(2), (2, 8, 16, 16), dtype=jnp.bfloat16)
    out3 = jax.block_until_ready(elu1(x3))
    ref3 = (jnp.where(x3.astype(jnp.float32) > 0,
                      x3.astype(jnp.float32),
                      jnp.exp(x3.astype(jnp.float32)) - 1.0) + 1.0).astype(jnp.bfloat16)
    assert out3.dtype == jnp.bfloat16
    assert jnp.allclose(out3.astype(jnp.float32), ref3.astype(jnp.float32),
                        atol=1e-2, rtol=1e-2), "mismatch vs reference (bf16)"

    print("KERNEL_OK")
</pallas_src>

<mosaic_0001>
module attributes {stable_mosaic.version = 11 : i64} {
  func.func @_elu1_kernel(%arg0: i32, %arg1: memref<8x256xf32, #tpu.memory_space<vmem>>, %arg2: memref<8x256xf32, #tpu.memory_space<vmem>>) attributes {dimension_semantics = [#tpu.dimension_semantics<parallel>], iteration_bounds = array<i64: 1>, scalar_prefetch = 0 : i64, scratch_operands = 0 : i64, tpu.core_type = #tpu.core_type<tc>, window_params = [{transform_indices = @transform_0, window_bounds = array<i64: 8, 256>}, {transform_indices = @transform_1, window_bounds = array<i64: 8, 256>}]} {
    %c0 = arith.constant 0 : index
    %c0_0 = arith.constant 0 : index
    %0 = vector.load %arg1[%c0, %c0_0] : memref<8x256xf32, #tpu.memory_space<vmem>>, vector<8x256xf32>
    %cst = arith.constant 0.000000e+00 : f32
    %1 = vector.broadcast %cst : f32 to vector<8x256xf32>
    %2 = arith.cmpf ogt, %0, %1 : vector<8x256xf32>
    %cst_1 = arith.constant 1.000000e+00 : f32
    %3 = vector.broadcast %cst_1 : f32 to vector<8x256xf32>
    %4 = arith.addf %0, %3 : vector<8x256xf32>
    %5 = math.exp %0 : vector<8x256xf32>
    %6 = arith.select %2, %4, %5 : vector<8x256xi1>, vector<8x256xf32>
    %c0_2 = arith.constant 0 : index
    %c0_3 = arith.constant 0 : index
    %7 = vector.load %arg2[%c0_2, %c0_3] : memref<8x256xf32, #tpu.memory_space<vmem>>, vector<8x256xf32>
    tpu.vector_store %arg2[%c0_2, %c0_3], %6 {strides = array<i32>} : memref<8x256xf32, #tpu.memory_space<vmem>>, vector<8x256xf32>,
    return
  }
  func.func @transform_0(%arg0: i32) -> (i32, i32) {
    %c0_i32 = arith.constant 0 : i32
    %c0_i32_0 = arith.constant 0 : i32
    return %arg0, %c0_i32 : i32, i32
  }
  func.func @transform_1(%arg0: i32) -> (i32, i32) {
    %c0_i32 = arith.constant 0 : i32
    %c0_i32_0 = arith.constant 0 : i32
    return %arg0, %c0_i32 : i32, i32
  }
}

</mosaic_0001>

<bundles_post_ra>
// kernel: tpu_custom_call.1
= control target key start
LH: loop header
LB: loop body
LE: loop exit
PB: predicated region body
PF: predicated region fallthrough
CT: control target
= control target key end

     0   :  { %6 = vsyncpa [#allocation3], 0  ;;  %s130_s0 = inlined_call_operand.hbm [shape: f32[8,256], index: 0, kind: input, shape index: {}]   ;;  %s131_s1 = inlined_call_operand.hbm [shape: f32[8,256], index: 1, kind: output, shape index: {}]  }
   0x1   :  { %7 = vsyncpa [#allocation4], 0  ;;  %s13_s8 = sshll.u32 %s130_s0, 4  ;;  %s112_s9 = smov [#allocation2]   ;;  %s14_s8 = int_to_ptr.hbm [resolvable:$true] %s13_s8 }
   0x2   :  { %s15_s10 = sshll.u32 %s112_s9, 4  ;;  %s16_s10 = int_to_ptr.vmem [resolvable:$true] %s15_s10 }
   0x3   :  { %18 = dma.hbm_to_vmem [thread:$0]  %s14_s8, 256, %s16_s10, [#allocation3]  }
   0x4   :  { %108 = dma.done.wait [#allocation3], 256  }
   0x5   :  { %109 = vsyncadd [#allocation3], 4294967040  ;;  %v23_v0 = vld [vmem:[#allocation2] sm:$0xff]  ;;  %v24_v1 = vld [vmem:[#allocation2 + $0x8] sm:$0xff]  ;;  %s113_s11 = smov [#allocation5]   ;;  %s44_s14 = sshll.u32 %s131_s1, 4  ;;  %s45_s14 = int_to_ptr.hbm [resolvable:$true] %s44_s14 }
   0x6   :  { %v29_v2 = vmul.f32 1.442695, %v23_v0  ;;  %v31_v3 = vmul.f32 1.442695, %v24_v1  ;;  %v27_v4 = vadd.f32 1.0, %v23_v0  ;;  %vm25_vm0 = vcmp.gt.f32.partialorder %v23_v0, 0.0 }
   0x7   :  { %v28_v5 = vadd.f32 1.0, %v24_v1  ;;  %s42_s12 = sshll.u32 %s113_s11, 4  ;;  %vm26_vm1 = vcmp.gt.f32.partialorder %v24_v1, 0.0  ;;  %s43_s12 = int_to_ptr.vmem [resolvable:$true] %s42_s12 }
   0x8   :  { %56 = vpow2.f32 %v29_v2 }
   0x9   :  { %58 = vpow2.f32 %v31_v3 }
   0xe   :  { %v57_v6 = vpop.eup %56 }
   0xf   :  { %v59_v7 = vpop.eup %58  ;;  %v33_v8 = vsel %vm25_vm0, %v27_v4, %v57_v6 }
  0x10   :  { %35 = vst [vmem:[#allocation5] sm:$0xff] %v33_v8  ;;  %v34_v9 = vsel %vm26_vm1, %v28_v5, %v59_v7 }
  0x11   :  { %36 = vst [vmem:[#allocation5 + $0x8] sm:$0xff] %v34_v9 }
  0x12   :  { %47 = dma.vmem_to_hbm [thread:$0]  %s43_s12, 256, %s45_s14, [#allocation4]  }
  0x13   :  { %110 = dma.done.wait [#allocation4], 256  }
  0x14   :  { %111 = vsyncadd [#allocation4], 4294967040 }
  0x15   :  { %52 = vsyncpa [#allocation3], 1 }
  0x16   :  { %53 = vsyncpa [#allocation4], 1 }

</bundles_post_ra>
